<compile_context>
chip_gen: v6e
topology: v6e:2x2x1
jax: 0.10.0
libtpu: 0.0.40
codegen_flags: <defaults>
</compile_context>

<pallas_src>
import functools

import jax
import jax.numpy as jnp
from jax.experimental import pallas as pl
from jax.experimental.pallas import tpu as pltpu


def _round_up(x: int, m: int) -> int:
    return ((x + m - 1) // m) * m


def _categorical_kernel(x_ref, w_ref, b_ref, logits_ref, probs_ref, *, num_valid):
    x = x_ref[...]                       # [TB, num_inputs]
    w = w_ref[...]                       # [num_inputs, NO_PAD]   (resident)
    b = b_ref[...]                       # [1, NO_PAD]            (resident)

    # Linear layer on the MXU, f32 accumulate.
    z = jnp.dot(x, w, preferred_element_type=jnp.float32) + b.astype(jnp.float32)

    # Mask lane-padding columns to -inf so they don't corrupt the softmax.
    no_pad = z.shape[-1]
    if num_valid != no_pad:
        col = jax.lax.broadcasted_iota(jnp.int32, z.shape, dimension=1)
        z = jnp.where(col < num_valid, z, -jnp.inf)

    # Stable softmax / logsumexp along the last (lane) axis.
    m = jnp.max(z, axis=-1, keepdims=True)
    e = jnp.exp(z - m)
    denom = jnp.sum(e, axis=-1, keepdims=True)

    # torch.distributions.Categorical(logits=...) stores normalized logits.
    logits_ref[...] = (z - (m + jnp.log(denom))).astype(logits_ref.dtype)
    # probs: EUP reciprocal (approx) — separate bundle slot, ~1e-3 relative error.
    probs_ref[...] = (e * pl.reciprocal(denom, approx=True)).astype(probs_ref.dtype)


def prepare_categorical_params(weight, bias, lane: int = 128):
    """One-time parameter prep (NOT per forward call).

    weight: [num_outputs, num_inputs] (PyTorch nn.Linear layout)
    bias:   [num_outputs]
    Returns (w_padded [num_inputs, NO_PAD], b_padded [1, NO_PAD], num_outputs).
    """
    num_outputs, num_inputs = weight.shape
    no_pad = _round_up(num_outputs, lane)
    w_padded = jnp.zeros((num_inputs, no_pad), weight.dtype).at[:, :num_outputs].set(weight.T)
    b_padded = jnp.zeros((1, no_pad), bias.dtype).at[0, :num_outputs].set(bias)
    return w_padded, b_padded, num_outputs


def categorical_net_forward(x, w_padded, b_padded, num_outputs, *, tb_max: int = 256):
    """x: [B, num_inputs]; w_padded/b_padded from prepare_categorical_params.

    Returns (logits, probs) with logits = normalized logits (z - logsumexp(z)),
    i.e. exactly the state CustomFixedCategorical / torch Categorical exposes.
    """
    B, num_inputs = x.shape
    no_pad = w_padded.shape[1]

    # Batch tile: second-to-last block dim must be a multiple of 8 or the full dim.
    if B <= tb_max:
        tb = B
    else:
        tb = max((tb_max // 8) * 8, 8)
    grid = (pl.cdiv(B, tb),)

    kernel = functools.partial(_categorical_kernel, num_valid=num_outputs)

    cost = pl.CostEstimate(
        flops=2 * B * num_inputs * no_pad,
        transcendentals=B * no_pad,
        bytes_accessed=(
            x.size * x.dtype.itemsize
            + w_padded.size * w_padded.dtype.itemsize
            + b_padded.size * b_padded.dtype.itemsize
            + 2 * B * no_pad * 4
        ),
    )

    logits_p, probs_p = pl.pallas_call(
        kernel,
        out_shape=(
            jax.ShapeDtypeStruct((B, no_pad), jnp.float32),
            jax.ShapeDtypeStruct((B, no_pad), jnp.float32),
        ),
        grid_spec=pltpu.PrefetchScalarGridSpec(
            num_scalar_prefetch=0,
            grid=grid,
            in_specs=[
                pl.BlockSpec((tb, num_inputs), lambda i: (i, 0)),       # x tile, pipelined
                pl.BlockSpec((num_inputs, no_pad), lambda i: (0, 0)),   # W resident
                pl.BlockSpec((1, no_pad), lambda i: (0, 0)),            # b resident
            ],
            out_specs=(
                pl.BlockSpec((tb, no_pad), lambda i: (i, 0)),           # normalized logits
                pl.BlockSpec((tb, no_pad), lambda i: (i, 0)),           # probs
            ),
        ),
        compiler_params=pltpu.CompilerParams(
            dimension_semantics=("parallel",),       # shard B tiles across TCs (v7x megacore)
            vmem_limit_bytes=32 * 1024 * 1024,       # safe on v5e/v6e/v7x for these tile sizes
        ),
        cost_estimate=cost,
    )(x, w_padded, b_padded)

    # Slice off the lane padding (cheap XLA slice in the wrapper).
    return logits_p[:, :num_outputs], probs_p[:, :num_outputs]


def _orthogonal_init(key, num_outputs, num_inputs, gain=0.01, dtype=jnp.float32):
    # Deterministic equivalent of nn.init.orthogonal_(weight, gain=0.01).
    rows, cols = num_outputs, num_inputs
    flat = jax.random.normal(key, (max(rows, cols), min(rows, cols)), dtype=jnp.float32)
    q, r = jnp.linalg.qr(flat)
    q = q * jnp.sign(jnp.diagonal(r))          # make decomposition unique
    if rows < cols:
        q = q.T
    return (gain * q[:rows, :cols]).astype(dtype)


if __name__ == "__main__":
    key = jax.random.PRNGKey(0)
    k_x, k_w = jax.random.split(key)

    batch = 16
    num_inputs = 32
    num_outputs = 16

    x = jax.random.normal(k_x, (batch, num_inputs), dtype=jnp.float32)
    weight = _orthogonal_init(k_w, num_outputs, num_inputs, gain=0.01)
    bias = jnp.zeros((num_outputs,), dtype=jnp.float32)  # nn.init.constant_(bias, 0)

    # One-time param prep (kept out of the hot forward path).
    w_p, b_p, n_out = prepare_categorical_params(weight, bias)

    # tb_max=8 -> grid of 2 steps here, exercising the pipelined/parallel B tiling.
    logits, probs = categorical_net_forward(x, w_p, b_p, n_out, tb_max=8)
    jax.block_until_ready((logits, probs))

    # Reference: torch Categorical(logits=z) state == log_softmax(z), softmax(z).
    raw = x @ weight.T + bias
    ref_logits = jax.nn.log_softmax(raw, axis=-1)
    ref_probs = jax.nn.softmax(raw, axis=-1)
    assert jnp.allclose(logits, ref_logits, atol=1e-5, rtol=1e-5)
    # probs use the approx EUP reciprocal -> relaxed tolerance.
    assert jnp.allclose(probs, ref_probs, atol=2e-3, rtol=2e-3)

    # TODO(synk): .sample() / .log_probs() / .mode() of CustomFixedCategorical are
    # host-side distribution utilities, not part of the module's forward pass.

    print("KERNEL_OK")
</pallas_src>

<mosaic_0001>
module attributes {stable_mosaic.version = 11 : i64} {
  func.func @_categorical_kernel(%arg0: i32, %arg1: memref<8x32xf32, #tpu.memory_space<vmem>>, %arg2: memref<32x128xf32, #tpu.memory_space<vmem>>, %arg3: memref<1x128xf32, #tpu.memory_space<vmem>>, %arg4: memref<8x128xf32, #tpu.memory_space<vmem>>, %arg5: memref<8x128xf32, #tpu.memory_space<vmem>>) attributes {dimension_semantics = [#tpu.dimension_semantics<parallel>], iteration_bounds = array<i64: 2>, scalar_prefetch = 0 : i64, scratch_operands = 0 : i64, tpu.core_type = #tpu.core_type<tc>, window_params = [{transform_indices = @transform_0, window_bounds = array<i64: 8, 32>}, {pipeline_mode = #tpu.pipeline_mode<synchronous>, transform_indices = @transform_1, window_bounds = array<i64: 32, 128>}, {pipeline_mode = #tpu.pipeline_mode<synchronous>, transform_indices = @transform_2, window_bounds = array<i64: 1, 128>}, {transform_indices = @transform_3, window_bounds = array<i64: 8, 128>}, {transform_indices = @transform_4, window_bounds = array<i64: 8, 128>}]} {
    %c0 = arith.constant 0 : index
    %c0_0 = arith.constant 0 : index
    %0 = vector.load %arg1[%c0, %c0_0] : memref<8x32xf32, #tpu.memory_space<vmem>>, vector<8x32xf32>
    %c0_1 = arith.constant 0 : index
    %c0_2 = arith.constant 0 : index
    %1 = vector.load %arg2[%c0_1, %c0_2] : memref<32x128xf32, #tpu.memory_space<vmem>>, vector<32x128xf32>
    %c0_3 = arith.constant 0 : index
    %c0_4 = arith.constant 0 : index
    %2 = vector.load %arg3[%c0_3, %c0_4] : memref<1x128xf32, #tpu.memory_space<vmem>>, vector<1x128xf32>
    %cst = arith.constant dense<0.000000e+00> : vector<8x128xf32>
    %3 = tpu.matmul %0, %1, %cst {dimension_numbers = #tpu.dot_dimension_numbers<[1], [0], [0], [1], [0, 0, 1, 1], [], []>} : vector<8x32xf32>, vector<32x128xf32>, vector<8x128xf32> -> vector<8x128xf32>
    %4 = vector.broadcast %2 : vector<1x128xf32> to vector<8x128xf32>
    %5 = arith.addf %3, %4 : vector<8x128xf32>
    %6 = tpu.iota {dimensions = array<i32: 1>} : vector<8x128xi32>
    %c16_i32 = arith.constant 16 : i32
    %7 = vector.broadcast %c16_i32 : i32 to vector<8x128xi32>
    %8 = arith.cmpi slt, %6, %7 : vector<8x128xi32>
    %cst_5 = arith.constant 0xFF800000 : f32
    %9 = vector.broadcast %cst_5 : f32 to vector<8x128xf32>
    %10 = arith.select %8, %5, %9 : vector<8x128xi1>, vector<8x128xf32>
    %cst_6 = arith.constant dense<0xFF800000> : vector<8xf32>
    %11 = vector.multi_reduction <maximumf>, %10, %cst_6 [1] : vector<8x128xf32> to vector<8xf32>
    %12 = vector.shape_cast %11 : vector<8xf32> to vector<8x1xf32>
    %13 = vector.broadcast %12 : vector<8x1xf32> to vector<8x128xf32>
    %14 = arith.subf %10, %13 : vector<8x128xf32>
    %15 = math.exp %14 : vector<8x128xf32>
    %cst_7 = arith.constant dense<0.000000e+00> : vector<8xf32>
    %16 = vector.multi_reduction <add>, %15, %cst_7 [1] : vector<8x128xf32> to vector<8xf32>
    %17 = vector.shape_cast %16 : vector<8xf32> to vector<8x1xf32>
    %18 = math.log %17 : vector<8x1xf32>
    %19 = arith.addf %12, %18 : vector<8x1xf32>
    %20 = vector.broadcast %19 : vector<8x1xf32> to vector<8x128xf32>
    %21 = arith.subf %10, %20 : vector<8x128xf32>
    %c0_8 = arith.constant 0 : index
    %c0_9 = arith.constant 0 : index
    %22 = vector.load %arg4[%c0_8, %c0_9] : memref<8x128xf32, #tpu.memory_space<vmem>>, vector<8x128xf32>
    tpu.vector_store %arg4[%c0_8, %c0_9], %21 {strides = array<i32>} : memref<8x128xf32, #tpu.memory_space<vmem>>, vector<8x128xf32>,
    %23 = tpu.reciprocal %17 {approx = true} : vector<8x1xf32> -> vector<8x1xf32>
    %24 = vector.broadcast %23 : vector<8x1xf32> to vector<8x128xf32>
    %25 = arith.mulf %15, %24 : vector<8x128xf32>
    %c0_10 = arith.constant 0 : index
    %c0_11 = arith.constant 0 : index
    %26 = vector.load %arg5[%c0_10, %c0_11] : memref<8x128xf32, #tpu.memory_space<vmem>>, vector<8x128xf32>
    tpu.vector_store %arg5[%c0_10, %c0_11], %25 {strides = array<i32>} : memref<8x128xf32, #tpu.memory_space<vmem>>, vector<8x128xf32>,
    return
  }
  func.func @transform_0(%arg0: i32) -> (i32, i32) {
    %c0_i32 = arith.constant 0 : i32
    %c0_i32_0 = arith.constant 0 : i32
    return %arg0, %c0_i32 : i32, i32
  }
  func.func @transform_1(%arg0: i32) -> (i32, i32) {
    %c0_i32 = arith.constant 0 : i32
    %c0_i32_0 = arith.constant 0 : i32
    %c0_i32_1 = arith.constant 0 : i32
    return %c0_i32, %c0_i32_0 : i32, i32
  }
  func.func @transform_2(%arg0: i32) -> (i32, i32) {
    %c0_i32 = arith.constant 0 : i32
    %c0_i32_0 = arith.constant 0 : i32
    %c0_i32_1 = arith.constant 0 : i32
    return %c0_i32, %c0_i32_0 : i32, i32
  }
  func.func @transform_3(%arg0: i32) -> (i32, i32) {
    %c0_i32 = arith.constant 0 : i32
    %c0_i32_0 = arith.constant 0 : i32
    return %arg0, %c0_i32 : i32, i32
  }
  func.func @transform_4(%arg0: i32) -> (i32, i32) {
    %c0_i32 = arith.constant 0 : i32
    %c0_i32_0 = arith.constant 0 : i32
    return %arg0, %c0_i32 : i32, i32
  }
}

</mosaic_0001>

<bundles_post_ra>
// kernel: tpu_custom_call.1
= control target key start
LH: loop header
LB: loop body
LE: loop exit
PB: predicated region body
PF: predicated region fallthrough
CT: control target
= control target key end

     0   :  { %10 = vsyncpa [#allocation3], 0  ;;  %s988_s0 = inlined_call_operand.hbm [shape: f32[16,32], index: 0, kind: input, shape index: {}]   ;;  %s989_s1 = inlined_call_operand.hbm [shape: f32[32,128], index: 1, kind: input, shape index: {}]   ;;  %s990_s2 = inlined_call_operand.vmem [shape: f32[1,128], index: 2, kind: input, shape index: {}]   ;;  %s991_s3 = inlined_call_operand.hbm [shape: f32[16,128], index: 3, kind: output, shape index: {0}]   ;;  %s992_s4 = inlined_call_operand.hbm [shape: f32[16,128], index: 4, kind: output, shape index: {1}]  }
   0x1   :  { %12 = vsyncpa [#allocation3 + $0x1], 0 }
   0x2   :  { %13 = vsyncpa [#allocation6], 0 }
   0x3   :  { %14 = vsyncpa [#allocation4], 0 }
   0x4   :  { %16 = vsyncpa [#allocation4 + $0x1], 0 }
   0x5   :  { %17 = vsyncpa [#allocation9], 0 }
   0x6   :  { %19 = vsyncpa [#allocation9 + $0x1], 0  ;;  %s782_s15 = smov 0   ;;  %s784_s16 = smov 0  }
   0x7   :  { %s786_s17 = smov 0   ;;  %s788_s18 = smov 0  }
   0x8 LB: > { %s803_s19 = sadd.s32 4294967295, %s747_s18   ;;  %s488_s20 = sadd.s32 4294967294, %s747_s18   ;;  %s747_s18 = sphi %s788_s18, %s1014_s18   ;;  %s743_s17 = sphi %s786_s17, %s1013_s17   ;;  %s739_s16 = sphi %s784_s16, %s1012_s16   ;;  %s735_s15 = sphi %s782_s15, %s1011_s15  }
   0x9   : > { %p45_p0 = scmp.ne.s32.totalorder %s739_s16, %s735_s15  ;;  %p993_p1 = scmp.eq.s32.totalorder %s803_s19, 0 }
   0xa   : > { %p117_p3 = scmp.eq.s32.totalorder %s488_s20, 1  ;;  %p489_p5 = scmp.ge.s32.totalorder %s747_s18, 1 }
   0xb   : > { %p812_p4 = por %p993_p1, %p45_p0  ;;  %p150_p7 = scmp.lt.s32.totalorder %s747_s18, 3 }
   0xc   : > { %p817_p6 = por %p117_p3, %p45_p0  ;;  %s749_s24 = smov [#allocation5]  }
   0xd   : > { %s997_s21 = scalar_select %p812_p4, 1, 0 }
   0xe   : > { %s998_s22 = scalar_select %p817_p6, 1, 0 }
   0xf   : > { %p822_p8 = pnand %p489_p5, %p150_p7  ;;  %s162_s25 = sshll.u32 %s749_s24, 4  ;;  %s163_s25 = int_to_ptr.vmem [resolvable:$true] %s162_s25 }
  0x10   : > { %s836_s27 = sadd.s32 1, %s747_s18   ;;  %s32_s28 = sadd.s32 1, %s743_s17 }
  0x11   : > { %s999_s23 = scalar_select %p822_p8, 1, 0 }
  0x12   : > { %p533_p9 = pneg %p822_p8  ;;  %s29_s29 = ssub.s32 %s747_s18, %s836_s27 }
  0x13   : > { %s606_s30 = scalar_lea.vmem %s163_s25, 512  ;;  %p614_p5 = scmp.lt.s32.totalorder %s163_s25, %s163_s25 }
  0x14   : > { %p831_p11 = pnand %p533_p9, %p993_p1  ;;  %p607_p13 = scmp.ne.s32.totalorder %s163_s25, %s606_s30 }
  0x15   : > { %p615_p7 = scmp.lt.s32.totalorder %s606_s30, %s606_s30 }
  0x16   : > { %p597_p12 = pneg %p831_p11 }
  0x17   : > { %p616_p10 = por %p615_p7, %p614_p5 }
  0x18   : > { %p609_p0 = pnand %p607_p13, %p597_p12 }
  0x1a   : > { %p610_p3 = pneg %p609_p0 }
  0x1c   : > { %p617_p2 = pnand %p616_p10, %p610_p3 }
  0x1e   : > { %620 = shalt.err (!%p617_p2)
}
  0x1f   : > { %s750_s5 = smov 128   ;;  %s751_s6 = smov 8  }
  0x20   : > { %536 = dma.hbm_to_vmem [thread:$0]  (!%p831_p11), %s989_s1, 512, %s163_s25, [#allocation6], %s750_s5, %s750_s5, %s751_s6  }
  0x21   : > { %p30_p9 = scmp.eq.s32.totalorder %s29_s29, 0  ;;  %p39_p12 = scmp.ne.s32.totalorder %s743_s17, %s739_s16 }
  0x22   : > { %p40_p10 = scmp.eq.s32.totalorder %s747_s18, 0  ;;  %p549_p2 = scmp.lt.s32.totalorder %s747_s18, 2 }
  0x23   : > { %s853_s9 = scalar_select %p30_p9, %s743_s17, %s32_s28  }
  0x24   : > { %p41_p13 = por %p40_p10, %p39_p12  ;;  %p1001_p0 = scmp.eq.s32.totalorder %s803_s19, 1 }
  0x25   : > { %s179_s11 = sand.u32 1, %s743_s17   ;;  %s493_s12 = sshll.u32 %s747_s18, 7 }
  0x26   : > { %p857_p3 = por %p1001_p0, %p39_p12  ;;  %s492_s13 = sshll.u32 %s179_s11, 3 }
  0x27   : > { %s866_s24 = scalar_lea.hbm %s988_s0, %s493_s12  ;;  %s183_s25 = scalar_lea.vmem [#allocation2], %s492_s13 }
  0x28   : > { %s1002_s10 = scalar_select %p857_p3, 1, 0 }
  0x29   : > { %s190_s26 = sshll.u32 %s183_s25, 4  ;;  %p868_p11 = pnand %p549_p2, %p41_p13  ;;  %s191_s26 = int_to_ptr.vmem [resolvable:$true] %s190_s26 }
  0x2a   : > { %s180_s29 = scalar_lea.sflag [#allocation3], %s179_s11  ;;  %s621_s30 = scalar_lea.hbm %s866_s24, 128 }
  0x2b   : > { %p622_p5 = scmp.ne.s32.totalorder %s866_s24, %s621_s30  ;;  %p623_p7 = pneg %p868_p11 }
  0x2c   : > { %s626_s7 = scalar_lea.hbm %s988_s0, 256  ;;  %p627_p10 = scmp.lt.s32.totalorder %s866_s24, %s988_s0 }
  0x2d   : > { %p624_p9 = pnand %p623_p7, %p622_p5  ;;  %p628_p2 = scmp.lt.s32.totalorder %s626_s7, %s621_s30 }
  0x2f   : > { %p625_p12 = pneg %p624_p9  ;;  %p629_p13 = por %p628_p2, %p627_p10 }
  0x31   : > { %p630_p0 = pnand %p629_p13, %p625_p12 }
  0x33   : > { %633 = shalt.err (!%p630_p0)
}
  0x34   : > { %s634_s13 = scalar_lea.vmem %s191_s26, 128  ;;  %s752_s11 = smov [#allocation2]  }
  0x35   : > { %p635_p1 = scmp.ne.s32.totalorder %s191_s26, %s634_s13  ;;  %s639_s14 = sshll.u32 %s752_s11, 4  ;;  %s640_s14 = int_to_ptr.vmem [resolvable:$false] %s639_s14 }
  0x36   : > { %s641_s20 = scalar_lea.vmem %s640_s14, 256  ;;  %p642_p5 = scmp.lt.s32.totalorder %s191_s26, %s640_s14 }
  0x37   : > { %p637_p6 = pnand %p635_p1, %p623_p7  ;;  %p643_p9 = scmp.lt.s32.totalorder %s641_s20, %s634_s13 }
  0x39   : > { %p638_p3 = pneg %p637_p6  ;;  %p644_p4 = por %p643_p9, %p642_p5 }
  0x3b   : > { %p645_p8 = pnand %p644_p4, %p638_p3 }
  0x3d   : > { %648 = shalt.err (!%p645_p8)
}
  0x3e   : > { %540 = dma.hbm_to_vmem [thread:$0]  (!%p868_p11), %s866_s24, 128, %s191_s26, %s180_s29  }
  0x3f   : > { %p1004_p12 = scmp.ne.s32.totalorder %s999_s23, 0 }
  0x40   : > { %s889_s25 = sand.u32 (!%p1004_p12), 1, %s739_s16   ;;  %p1005_p1 = scmp.ne.s32.totalorder (!%p1004_p12), %s997_s21, 0 }
  0x41   : > { %199 = sbr.rel (%p1004_p12) target bundleno = 626 (0x272), region = 32  ;;  %s892_s30 = sshll.u32 (!%p1004_p12), %s889_s25, 3 }
  0x42   : > { %s202_s5 = scalar_lea.sflag (!%p1004_p12), [#allocation3], %s889_s25  ;;  %s205_s6 = scalar_lea.vmem (!%p1004_p12), [#allocation2], %s892_s30 }
  0x46   : > { %718 = dma.done.wait (%p1005_p1), %s202_s5, 128  }
  0x47   : > { %720 = vsyncadd (%p1005_p1), %s202_s5, 4294967168  ;;  %p1006_p4 = scmp.eq.s32.totalorder %s803_s19, 0 }
  0x49   : > { %722 = dma.done.wait (%p1006_p4), [#allocation6], 512   ;;  %p1007_p6 = pmov %p1006_p4 }
  0x4a   : > { %v753_v0 = vmov 0.0   ;;  %vm754_vm0 = vmmov 0   ;;  %v243_v1 = vld [vmem:[#allocation5 + $0x18] sm:$0xff]  ;;  %v242_v2 = vld [vmem:[#allocation5 + $0x10] sm:$0xff]  ;;  %v241_v3 = vld [vmem:[#allocation5 + $0x8] sm:$0xff]  ;;  %vm251_vm1 = vcmask 261120   ;;  %v325_v6 = vlaneseq }
  0x4b   : > { %724 = vsyncadd (%p1007_p6), [#allocation6], 4294966784  ;;  %512 = vmatprep.subr.mxu0 %v753_v0  ;;  %520 = vmatprep.mubr.msk.f32.mxu0 %vm754_vm0, %v753_v0  ;;  %v240_v4 = vld [vmem:[#allocation5] sm:$0xff]  ;;  %v239_v5 = vld [vmem:[%s205_s6] sm:$0xff]  ;;  %s503_s24 = sshll.u32 %s803_s19, 7  ;;  %s238_s26 = scalar_lea.vmem [#allocation8], %s892_s30 }
  0x4c   : > { %513 = vmatpush3.msra.mxu0 %v243_v1  ;;  %v326_v7 = vand.u32 127, %v325_v6  ;;  %v499_v8 = vld [vmem:[%s990_s2] ss:$0 sm:$0xff]  ;;  %s376_s28 = sshll.u32 %s238_s26, 4  ;;  %s231_s29 = scalar_lea.vmem [#allocation7], %s892_s30  ;;  %s917_s28 = int_to_ptr.vmem [resolvable:$true] %s376_s28 }
  0x4d   : > { %514 = vmatprep.subr.mxu0 %v753_v0  ;;  %s363_s7 = sshll.u32 %s231_s29, 4  ;;  %s915_s13 = scalar_lea.hbm %s992_s4, %s503_s24  ;;  %s924_s7 = int_to_ptr.vmem [resolvable:$true] %s363_s7 }
  0x4e   : > { %515 = vmatpush3.msra.mxu0 %v242_v2  ;;  %vm327_vm2 = vcmp.lt.s32.totalorder %v326_v7, 16  ;;  %s922_s14 = scalar_lea.hbm %s991_s3, %s503_s24  ;;  %s350_s20 = scalar_lea.sflag [#allocation9], %s889_s25 }
  0x4f   : > { %516 = vmatprep.subr.mxu0 %v753_v0  ;;  %s649_s5 = scalar_lea.vmem %s917_s28, 128  ;;  %p1008_p3 = scmp.ne.s32.totalorder %s1002_s10, 0 }
  0x50   : > { %517 = vmatpush3.msra.mxu0 %v241_v3  ;;  %p650_p8 = scmp.ne.s32.totalorder %s917_s28, %s649_s5  ;;  %s755_s6 = smov [#allocation8]  }
  0x51   : > { %518 = vmatprep.subr.mxu0 %v753_v0  ;;  %s653_s21 = sshll.u32 %s755_s6, 4  ;;  %s654_s21 = int_to_ptr.vmem [resolvable:$false] %s653_s21 }
  0x52   : > { %519 = vmatpush3.msra.mxu0 %v240_v4  ;;  %p651_p11 = pnand %p650_p8, %p1008_p3  ;;  %s655_s23 = scalar_lea.vmem %s654_s21, 256 }
  0x53   : > { %521 = vmatmul.mubr.msk.f32.vlgmr.msra.gmra.mxu0 %vm251_vm1, %v239_v5  ;;  %p656_p10 = scmp.lt.s32.totalorder %s917_s28, %s654_s21  ;;  %p657_p2 = scmp.lt.s32.totalorder %s655_s23, %s649_s5 }
  0x54   : > { %p652_p7 = pneg %p651_p11 }
  0x55   : > { %p658_p13 = por %p657_p2, %p656_p10 }
  0x57   : > { %p659_p0 = pnand %p658_p13, %p652_p7 }
 0x113   : > { %v321_v9 = vpop.f32.mrf.mxu0 }
 0x114   : > { %v322_v10 = vadd.f32 %v499_v8, %v321_v9 }
 0x115   : > { %v522_v11 = vpop.f32.mrf.mxu0 }
 0x116   : > { %v328_v12 = vsel %vm327_vm2, %v322_v10, -inf }
 0x117   : > { %329 = vmax.xlane.f32.xlu0 %v328_v12 }
 0x1a0   : > { %v330_v13 = vpop.xlane.xlu0 %329 }
 0x1a1   : > { %v331_v14 = vsub.f32 %v328_v12, %v330_v13 }
 0x1a3   : > { %v332_v15 = vmul.f32 1.442695, %v331_v14 }
 0x1a5   : > { %589 = vpow2.f32 %v332_v15 }
 0x1b2   : > { %v590_v16 = vpop.eup %589 }
 0x1b3   : > { %334 = vadd.xlane.f32.xlu0 %v590_v16 }
 0x23c   : > { %v335_v17 = vpop.xlane.xlu0 %334 }
 0x23d   : > { %591 = vlog2.f32 %v335_v17 }
 0x23e   : > { %593 = vrcp.f32 %v335_v17 }
 0x24a   : > { %v592_v18 = vpop.eup %591 }
 0x24b   : > { %v594_v19 = vpop.eup %593  ;;  %v337_v20 = vmul.f32 0.6931472, %v592_v18 }
 0x24c   : > { %v342_v21 = vmul.f32 %v594_v19, %v590_v16 }
 0x24d   : > { %v338_v22 = vadd.f32 %v337_v20, %v330_v13 }
 0x24e   : > { %343 = vst [vmem:[%s238_s26] sm:$0xff] %v342_v21 }
 0x24f   : > { %v339_v23 = vsub.f32 %v328_v12, %v338_v22 }
 0x250   : > { %662 = shalt.err (!%p659_p0)
}
 0x251   : > { %s663_s24 = scalar_lea.hbm %s915_s13, 128  ;;  %s667_s12 = scalar_lea.hbm %s992_s4, 256 }
 0x252   : > { %p664_p5 = scmp.ne.s32.totalorder %s915_s13, %s663_s24  ;;  %p668_p1 = scmp.lt.s32.totalorder %s915_s13, %s992_s4 }
 0x253   : > { %p669_p4 = scmp.lt.s32.totalorder %s667_s12, %s663_s24 }
 0x254   : > { %p665_p9 = pnand %p664_p5, %p1008_p3 }
 0x255   : > { %p670_p6 = por %p669_p4, %p668_p1 }
 0x256   : > { %p666_p12 = pneg %p665_p9 }
 0x258   : > { %p671_p8 = pnand %p670_p6, %p666_p12 }
 0x25a   : > { %674 = shalt.err (!%p671_p8)
}
 0x25b   : > { %530 = dma.vmem_to_hbm [thread:$0]  (%p1008_p3), %s917_s28, 128, %s915_s13, %s350_s20   ;;  %340 = vst [vmem:[%s231_s29] sm:$0xff] %v339_v23 }
 0x25c   : > { %s345_s5 = scalar_lea.sflag [#allocation4], %s889_s25  ;;  %s675_s6 = scalar_lea.vmem %s924_s7, 128 }
 0x25d   : > { %p676_p11 = scmp.ne.s32.totalorder %s924_s7, %s675_s6  ;;  %s756_s21 = smov [#allocation7]  }
 0x25e   : > { %s679_s23 = sshll.u32 %s756_s21, 4  ;;  %s680_s23 = int_to_ptr.vmem [resolvable:$false] %s679_s23 }
 0x25f   : > { %p677_p7 = pnand %p676_p11, %p1008_p3  ;;  %s681_s24 = scalar_lea.vmem %s680_s23, 256 }
 0x260   : > { %p682_p2 = scmp.lt.s32.totalorder %s924_s7, %s680_s23  ;;  %p683_p13 = scmp.lt.s32.totalorder %s681_s24, %s675_s6 }
 0x261   : > { %p678_p10 = pneg %p677_p7 }
 0x262   : > { %p684_p0 = por %p683_p13, %p682_p2 }
 0x264   : > { %p685_p5 = pnand %p684_p0, %p678_p10 }
 0x266   : > { %688 = shalt.err (!%p685_p5)
}
 0x267   : > { %s689_s30 = scalar_lea.hbm %s922_s14, 128  ;;  %s693_s29 = scalar_lea.hbm %s991_s3, 256 }
 0x268   : > { %p690_p9 = scmp.ne.s32.totalorder %s922_s14, %s689_s30  ;;  %p694_p4 = scmp.lt.s32.totalorder %s922_s14, %s991_s3 }
 0x269   : > { %p695_p6 = scmp.lt.s32.totalorder %s693_s29, %s689_s30 }
 0x26a   : > { %p691_p12 = pnand %p690_p9, %p1008_p3 }
 0x26b   : > { %p696_p8 = por %p695_p6, %p694_p4 }
 0x26c   : > { %p692_p1 = pneg %p691_p12 }
 0x26e   : > { %p697_p11 = pnand %p696_p8, %p692_p1 }
 0x270   : > { %700 = shalt.err (!%p697_p11)
}
 0x271   : > { %529 = dma.vmem_to_hbm [thread:$0]  (%p1008_p3), %s924_s7, 128, %s922_s14, %s345_s5  }
 0x272 PF: > { %s388_s26 = sand.u32 1, %s735_s15   ;;  %p1009_p7 = scmp.ne.s32.totalorder %s998_s22, 0 }
 0x273   : > { %p1010_p10 = scmp.ge.s32.totalorder %s747_s18, 2  ;;  %s389_s8 = scalar_lea.sflag [#allocation4], %s388_s26 }
 0x275   : > { %p542_p2 = pnand %p1010_p10, %p1009_p7 }
 0x277   : > { %p543_p13 = pneg %p542_p2 }
 0x279   : > { %726 = dma.done.wait (%p543_p13), %s389_s8, 128  }
 0x27a   : > { %728 = vsyncadd (%p543_p13), %s389_s8, 4294967168  ;;  %s398_s12 = scalar_lea.sflag [#allocation9], %s388_s26 }
 0x27b   : > { %730 = dma.done.wait (%p543_p13), %s398_s12, 128  }
 0x27c   : > { %732 = vsyncadd (%p543_p13), %s398_s12, 4294967168  ;;  %p22_p3 = scmp.ge.s32.totalorder %s836_s27, 4   ;;  %s1011_s15 = smov %s739_s16 }
 0x27d   : > { %s1012_s16 = smov %s743_s17  ;;  %s1013_s17 = smov %s853_s9 }
 0x27e   : > { %s1014_s18 = smov %s836_s27  ;;  %24 = sbr.rel (!%p22_p3) target bundleno = 8 (0x8), region = 98 }
 0x283   :  { %403 = vsyncpa [#allocation3], 1 }
 0x284   :  { %405 = vsyncpa [#allocation3 + $0x1], 1 }
 0x285   :  { %406 = vsyncpa [#allocation6], 1 }
 0x286   :  { %407 = vsyncpa [#allocation4], 1 }
 0x287   :  { %409 = vsyncpa [#allocation4 + $0x1], 1 }
 0x288   :  { %410 = vsyncpa [#allocation9], 1 }
 0x289   :  { %412 = vsyncpa [#allocation9 + $0x1], 1 }

</bundles_post_ra>
